<compile_context>
chip_gen: v7x
topology: tpu7x:2x2x1
jax: 0.10.0
libtpu: 0.0.40
codegen_flags: <defaults>
</compile_context>

<pallas_src>
import functools

import numpy as np
import jax
import jax.numpy as jnp
from jax.experimental import pallas as pl
from jax.experimental.pallas import tpu as pltpu

VMEM = pl.BlockSpec(memory_space=pltpu.MemorySpace.VMEM)


# ----------------------------- in-kernel helpers ----------------------------- #

def _conv3_reflect(x, k3, axis, n):
    """3-tap convolution along `axis` with 'reflect' (no edge repeat) padding."""
    k0, k1, k2 = k3
    idx = jax.lax.broadcasted_iota(jnp.int32, x.shape, axis)
    prev = pltpu.roll(x, shift=1, axis=axis)          # x[i-1]  (wraps at i == 0)
    nxt = pltpu.roll(x, shift=n - 1, axis=axis)       # x[i+1]  (wraps at i == n-1)
    prev_r = jnp.where(idx == 0, nxt, prev)           # reflect: x[-1] -> x[1]
    nxt_r = jnp.where(idx == n - 1, prev, nxt)        # reflect: x[n]  -> x[n-2]
    return k0 * prev_r + k1 * x + k2 * nxt_r


def _shear_cols(x, shifts, w, n_w):
    """Horizontal shear pass: out[i, j] = sum_k w[i, k] * x[i, j + shifts[k]] (zero outside)."""
    col = jax.lax.broadcasted_iota(jnp.int32, x.shape, 1)
    acc = jnp.zeros(x.shape, jnp.float32)
    for k, s in enumerate(shifts):
        if s == 0:
            shifted = x
        else:
            rolled = pltpu.roll(x, shift=(-s) % n_w, axis=1)   # rolled[i,j] = x[i,(j+s)%W]
            shifted = jnp.where((col + s >= 0) & (col + s < n_w), rolled, 0.0)
        acc = acc + w[:, k:k + 1] * shifted
    return acc


def _shear_rows(x, shifts, w, n_h):
    """Vertical shear pass: out[i, j] = sum_k w[k, j] * x[i + shifts[k], j] (zero outside)."""
    row = jax.lax.broadcasted_iota(jnp.int32, x.shape, 0)
    acc = jnp.zeros(x.shape, jnp.float32)
    for k, s in enumerate(shifts):
        if s == 0:
            shifted = x
        else:
            rolled = pltpu.roll(x, shift=(-s) % n_h, axis=0)   # rolled[i,j] = x[(i+s)%H,j]
            shifted = jnp.where((row + s >= 0) & (row + s < n_h), rolled, 0.0)
        acc = acc + w[k:k + 1, :] * shifted
    return acc


def _make_fused_image_kernel(cfg):
    """Builds the fused image-augmentation kernel, specialized on the static flags."""
    apply_inv = cfg["apply_inv"]
    apply_blur = cfg["apply_blur"]
    apply_rot = cfg["apply_rot"]
    apply_sharp = cfg["apply_sharp"]
    new_h, new_w = cfg["new_h"], cfg["new_w"]
    max_val = cfg["max_val"]
    gk = cfg["gauss_k"]
    sharp_factor = cfg["sharp_factor"]
    dx_shifts, dy_shifts = cfg["dx_shifts"], cfg["dy_shifts"]

    def kernel(*refs):
        img_ref, rh_ref, rwt_ref = refs[0], refs[1], refs[2]
        out_ref = refs[-1]

        # Resize (+ flips folded into rh / rwt): two bf16 MXU matmuls, f32 accumulation.
        t = jnp.dot(rh_ref[...], img_ref[...], preferred_element_type=jnp.float32)
        t = jnp.dot(t.astype(jnp.bfloat16), rwt_ref[...], preferred_element_type=jnp.float32)

        if apply_inv:                       # RandomInvert
            t = max_val - t

        if apply_blur:                      # RandomGaussianBlur 3x3 (separable, reflect pad)
            t = _conv3_reflect(t, gk, 0, new_h)
            t = _conv3_reflect(t, gk, 1, new_w)

        if apply_rot:                       # RandomRotation: three-shear (Paeth) warp
            wx = refs[3][...]               # (new_h, n_dx)  per-row shear weights
            wy = refs[4][...]               # (n_dy, new_w)  per-column shear weights
            t = _shear_cols(t, dx_shifts, wx, new_w)
            t = _shear_rows(t, dy_shifts, wy, new_h)
            t = _shear_cols(t, dx_shifts, wx, new_w)

        # TODO(synk): K.RandomEqualize (histogram equalization) needs histogram/scatter; skipped.

        if apply_sharp:                     # RandomSharpness
            b = 1.0 / 3.0
            box = _conv3_reflect(t, (b, b, b), 0, new_h)
            box = _conv3_reflect(box, (b, b, b), 1, new_w)
            # 3x3 kernel [[1,1,1],[1,5,1],[1,1,1]]/13 == 9/13 * box3x3 + 4/13 * identity
            blurred = (9.0 / 13.0) * box + (4.0 / 13.0) * t
            blended = jnp.clip(sharp_factor * t + (1.0 - sharp_factor) * blurred, 0.0, max_val)
            rows = jax.lax.broadcasted_iota(jnp.int32, t.shape, 0)
            cols = jax.lax.broadcasted_iota(jnp.int32, t.shape, 1)
            interior = (rows > 0) & (rows < new_h - 1) & (cols > 0) & (cols < new_w - 1)
            t = jnp.where(interior, blended, t)        # border pixels stay untouched

        out_ref[...] = t

    return kernel


# ----------------------------- host-side glue ----------------------------- #

@functools.lru_cache(maxsize=64)
def _bilinear_resize_matrix(out_size, in_size):
    # TODO(synk): Kornia's antialias prefilter (active only when downscaling) not implemented.
    i = np.arange(out_size, dtype=np.float64)
    src = np.clip((i + 0.5) * (in_size / out_size) - 0.5, 0.0, in_size - 1.0)
    lo = np.floor(src).astype(np.int64)
    hi = np.minimum(lo + 1, in_size - 1)
    w_hi = src - lo
    w_lo = 1.0 - w_hi
    m = np.zeros((out_size, in_size), dtype=np.float32)
    np.add.at(m, (np.arange(out_size), lo), w_lo)
    np.add.at(m, (np.arange(out_size), hi), w_hi)
    return m


def _gaussian_kernel3(sigma):
    x = np.array([-1.0, 0.0, 1.0])
    k = np.exp(-(x ** 2) / (2.0 * sigma ** 2))
    k = k / k.sum()
    return (float(k[0]), float(k[1]), float(k[2]))


def _shear_shift_table(offsets):
    """Per-line linear-interp resample -> (integer shifts used, weight table (L, n_shifts))."""
    d = np.floor(offsets).astype(np.int64)
    f = (offsets - d).astype(np.float32)
    shifts = sorted(set(d.tolist()) | set((d + 1).tolist()))
    tbl = np.zeros((offsets.shape[0], len(shifts)), dtype=np.float32)
    for k, s in enumerate(shifts):
        tbl[:, k] = np.where(d == s, 1.0 - f, 0.0) + np.where(d + 1 == s, f, 0.0)
    return shifts, tbl


def _geom_affine(h, w, new_h, new_w, hflip, vflip, rot, angle_deg):
    S = np.array([[new_w / w, 0.0, 0.0], [0.0, new_h / h, 0.0], [0.0, 0.0, 1.0]])
    F = np.eye(3)
    if hflip:
        F = np.array([[-1.0, 0.0, new_w - 1.0], [0.0, 1.0, 0.0], [0.0, 0.0, 1.0]]) @ F
    if vflip:
        F = np.array([[1.0, 0.0, 0.0], [0.0, -1.0, new_h - 1.0], [0.0, 0.0, 1.0]]) @ F
    R = np.eye(3)
    if rot:
        th = np.deg2rad(angle_deg)
        c, s = np.cos(th), np.sin(th)
        cx, cy = (new_w - 1) / 2.0, (new_h - 1) / 2.0
        R = np.array([[c, -s, cx - c * cx + s * cy],
                      [s, c, cy - s * cx - c * cy],
                      [0.0, 0.0, 1.0]])
    return (R @ F @ S)[:2].astype(np.float32)


# ------------------------------- Augmenter ------------------------------- #

class Augmenter:
    def __init__(self, p: float, scale: float, max_val: float):
        self.p = p
        self.scale = scale
        self.max_val = float(max_val)

    def __call__(self, image, keypoints, bboxes, key):
        image = jnp.asarray(image)
        h, w = image.shape[-2:]
        new_w = int(w * self.scale)
        new_h = int(h * self.scale)

        # ---- host randomness: single device->host sync for all draws ----
        u = np.asarray(jax.random.uniform(key, (11,)))
        _height_crop_factor = 0.5 + 0.5 * float(u[0])   # sampled but unused (as in reference)
        (apply_inv, apply_blur, apply_hflip, apply_vflip,
         apply_rot, apply_eq, apply_sharp) = [bool(v < self.p) for v in u[1:8]]
        sigma = 0.1 + 1.9 * float(u[8])
        angle = -5.0 + 10.0 * float(u[9])
        sharp_factor = 0.5 * float(u[10])

        # ---- host-side operator glue (small separable matrices only; resize ops are cached) --
        rh = _bilinear_resize_matrix(new_h, h)          # (new_h, h)
        rwt = _bilinear_resize_matrix(new_w, w).T       # (w, new_w)
        if apply_vflip:                                 # fold flips into the resize operator
            rh = rh[::-1, :]
        if apply_hflip:
            rwt = rwt[:, ::-1]

        img2d = jnp.asarray(image, jnp.bfloat16).reshape(h, w)
        inputs = [img2d, jnp.asarray(rh, jnp.bfloat16), jnp.asarray(rwt, jnp.bfloat16)]

        dx_shifts, dy_shifts = (), ()
        if apply_rot:
            th = np.deg2rad(angle)
            t_sh = np.tan(th / 2.0)
            s_sh = np.sin(th)
            cyc = (new_h - 1) / 2.0
            cxc = (new_w - 1) / 2.0
            # Paeth decomposition of the inverse-rotation sampling map:
            #   Sx(tan(th/2)) . Sy(-sin th) . Sx(tan(th/2)) == R(-th)
            dx_shifts, wx_np = _shear_shift_table(t_sh * (np.arange(new_h) - cyc))
            dy_shifts, wy_np = _shear_shift_table(-s_sh * (np.arange(new_w) - cxc))
            inputs += [jnp.asarray(wx_np),                                    # (new_h, n_dx)
                       jnp.asarray(np.ascontiguousarray(wy_np.T))]            # (n_dy, new_w)

        cfg = dict(
            apply_inv=apply_inv, apply_blur=apply_blur, apply_rot=apply_rot,
            apply_sharp=apply_sharp, new_h=new_h, new_w=new_w, max_val=self.max_val,
            gauss_k=_gaussian_kernel3(sigma) if apply_blur else (0.0, 1.0, 0.0),
            sharp_factor=sharp_factor, dx_shifts=tuple(dx_shifts), dy_shifts=tuple(dy_shifts))

        # Single fused pallas_call for the whole image pipeline (whole arrays fit VMEM easily).
        out_img = pl.pallas_call(
            _make_fused_image_kernel(cfg),
            out_shape=jax.ShapeDtypeStruct((new_h, new_w), jnp.float32),
            in_specs=[VMEM] * len(inputs),
            out_specs=VMEM,
            compiler_params=pltpu.CompilerParams(vmem_limit_bytes=32 * 1024 * 1024),
        )(*inputs)

        # TODO(synk): K.RandomEqualize (histogram equalization) skipped entirely.
        del apply_eq

        # ---- keypoints / bboxes: tiny affine + corner min/max in plain jnp (no kernel) ----
        A = _geom_affine(h, w, new_h, new_w, apply_hflip, apply_vflip, apply_rot, angle)
        kp = jnp.asarray(keypoints, jnp.float32)
        bb = jnp.asarray(bboxes, jnp.float32)
        out_kp = kp @ jnp.asarray(A[:, :2].T) + jnp.asarray(A[:, 2])
        x1, y1, x2, y2 = bb[:, 0], bb[:, 1], bb[:, 2], bb[:, 3]
        cxs = jnp.stack([x1, x2, x2, x1], axis=1)
        cys = jnp.stack([y1, y1, y2, y2], axis=1)
        tx = A[0, 0] * cxs + A[0, 1] * cys + A[0, 2]
        ty = A[1, 0] * cxs + A[1, 1] * cys + A[1, 2]
        out_bb = jnp.stack([tx.min(axis=1), ty.min(axis=1),
                            tx.max(axis=1), ty.max(axis=1)], axis=1)
        return out_img, out_kp, out_bb


if __name__ == "__main__":
    key = jax.random.PRNGKey(0)
    k_img, k_kp, k_bb, k_aug = jax.random.split(key, 4)
    H = W = 64
    image = jax.random.uniform(k_img, (1, H, W), dtype=jnp.float32)             # (C=1, H, W)
    keypoints = jax.random.uniform(k_kp, (8, 2), dtype=jnp.float32) * (W - 1.0)  # (x, y) pixels
    xy1 = jax.random.uniform(k_bb, (3, 2), dtype=jnp.float32) * (W / 2 - 1.0)
    wh = jax.random.uniform(jax.random.fold_in(k_bb, 1), (3, 2), dtype=jnp.float32) * (W / 2 - 1.0) + 1.0
    bboxes = jnp.concatenate([xy1, xy1 + wh], axis=1)                            # xyxy

    aug = Augmenter(p=0.5, scale=2.0, max_val=1.0)
    out_img, out_kp, out_bb = aug(image, keypoints, bboxes, k_aug)
    jax.block_until_ready((out_img, out_kp, out_bb))
    assert out_img.shape == (2 * H, 2 * W)
    assert out_kp.shape == (8, 2)
    assert out_bb.shape == (3, 4)
    print("KERNEL_OK")
</pallas_src>

<mosaic_0001>
module attributes {stable_mosaic.version = 11 : i64} {
  func.func @kernel(%arg0: memref<64x64xbf16, #tpu.memory_space<vmem>>, %arg1: memref<128x64xbf16, #tpu.memory_space<vmem>>, %arg2: memref<64x128xbf16, #tpu.memory_space<vmem>>, %arg3: memref<128x128xf32, #tpu.memory_space<vmem>>) attributes {dimension_semantics = [], scalar_prefetch = 0 : i64, scratch_operands = 0 : i64, tpu.core_type = #tpu.core_type<tc>} {
    %c0 = arith.constant 0 : index
    %c0_0 = arith.constant 0 : index
    %0 = vector.load %arg1[%c0, %c0_0] : memref<128x64xbf16, #tpu.memory_space<vmem>>, vector<128x64xbf16>
    %c0_1 = arith.constant 0 : index
    %c0_2 = arith.constant 0 : index
    %1 = vector.load %arg0[%c0_1, %c0_2] : memref<64x64xbf16, #tpu.memory_space<vmem>>, vector<64x64xbf16>
    %cst = arith.constant dense<0.000000e+00> : vector<128x64xf32>
    %2 = tpu.matmul %0, %1, %cst {dimension_numbers = #tpu.dot_dimension_numbers<[1], [0], [0], [1], [0, 0, 1, 1], [], []>} : vector<128x64xbf16>, vector<64x64xbf16>, vector<128x64xf32> -> vector<128x64xf32>
    %3 = arith.truncf %2 : vector<128x64xf32> to vector<128x64xbf16>
    %c0_3 = arith.constant 0 : index
    %c0_4 = arith.constant 0 : index
    %4 = vector.load %arg2[%c0_3, %c0_4] : memref<64x128xbf16, #tpu.memory_space<vmem>>, vector<64x128xbf16>
    %cst_5 = arith.constant dense<0.000000e+00> : vector<128x128xf32>
    %5 = tpu.matmul %3, %4, %cst_5 {dimension_numbers = #tpu.dot_dimension_numbers<[1], [0], [0], [1], [0, 0, 1, 1], [], []>} : vector<128x64xbf16>, vector<64x128xbf16>, vector<128x128xf32> -> vector<128x128xf32>
    %6 = tpu.iota {dimensions = array<i32: 0>} : vector<128x128xi32>
    %c1_i32 = arith.constant 1 : i32
    %7 = tpu.dynamic_rotate %5 by %c1_i32 dim 0 : vector<128x128xf32>, i32 -> vector<128x128xf32>
    %c127_i32 = arith.constant 127 : i32
    %8 = tpu.dynamic_rotate %5 by %c127_i32 dim 0 : vector<128x128xf32>, i32 -> vector<128x128xf32>
    %c0_i32 = arith.constant 0 : i32
    %9 = vector.broadcast %c0_i32 : i32 to vector<128x128xi32>
    %10 = arith.cmpi eq, %6, %9 : vector<128x128xi32>
    %11 = arith.select %10, %8, %7 : vector<128x128xi1>, vector<128x128xf32>
    %c127_i32_6 = arith.constant 127 : i32
    %12 = vector.broadcast %c127_i32_6 : i32 to vector<128x128xi32>
    %13 = arith.cmpi eq, %6, %12 : vector<128x128xi32>
    %14 = arith.select %13, %7, %8 : vector<128x128xi1>, vector<128x128xf32>
    %cst_7 = arith.constant 0.333333343 : f32
    %15 = vector.broadcast %cst_7 : f32 to vector<128x128xf32>
    %16 = arith.mulf %15, %11 : vector<128x128xf32>
    %cst_8 = arith.constant 0.333333343 : f32
    %17 = vector.broadcast %cst_8 : f32 to vector<128x128xf32>
    %18 = arith.mulf %17, %5 : vector<128x128xf32>
    %19 = arith.addf %16, %18 : vector<128x128xf32>
    %cst_9 = arith.constant 0.333333343 : f32
    %20 = vector.broadcast %cst_9 : f32 to vector<128x128xf32>
    %21 = arith.mulf %20, %14 : vector<128x128xf32>
    %22 = arith.addf %19, %21 : vector<128x128xf32>
    %23 = tpu.iota {dimensions = array<i32: 1>} : vector<128x128xi32>
    %c1_i32_10 = arith.constant 1 : i32
    %24 = tpu.dynamic_rotate %22 by %c1_i32_10 dim 1 : vector<128x128xf32>, i32 -> vector<128x128xf32>
    %c127_i32_11 = arith.constant 127 : i32
    %25 = tpu.dynamic_rotate %22 by %c127_i32_11 dim 1 : vector<128x128xf32>, i32 -> vector<128x128xf32>
    %c0_i32_12 = arith.constant 0 : i32
    %26 = vector.broadcast %c0_i32_12 : i32 to vector<128x128xi32>
    %27 = arith.cmpi eq, %23, %26 : vector<128x128xi32>
    %28 = arith.select %27, %25, %24 : vector<128x128xi1>, vector<128x128xf32>
    %c127_i32_13 = arith.constant 127 : i32
    %29 = vector.broadcast %c127_i32_13 : i32 to vector<128x128xi32>
    %30 = arith.cmpi eq, %23, %29 : vector<128x128xi32>
    %31 = arith.select %30, %24, %25 : vector<128x128xi1>, vector<128x128xf32>
    %cst_14 = arith.constant 0.333333343 : f32
    %32 = vector.broadcast %cst_14 : f32 to vector<128x128xf32>
    %33 = arith.mulf %32, %28 : vector<128x128xf32>
    %cst_15 = arith.constant 0.333333343 : f32
    %34 = vector.broadcast %cst_15 : f32 to vector<128x128xf32>
    %35 = arith.mulf %34, %22 : vector<128x128xf32>
    %36 = arith.addf %33, %35 : vector<128x128xf32>
    %cst_16 = arith.constant 0.333333343 : f32
    %37 = vector.broadcast %cst_16 : f32 to vector<128x128xf32>
    %38 = arith.mulf %37, %31 : vector<128x128xf32>
    %39 = arith.addf %36, %38 : vector<128x128xf32>
    %cst_17 = arith.constant 0.692307711 : f32
    %40 = vector.broadcast %cst_17 : f32 to vector<128x128xf32>
    %41 = arith.mulf %40, %39 : vector<128x128xf32>
    %cst_18 = arith.constant 0.307692319 : f32
    %42 = vector.broadcast %cst_18 : f32 to vector<128x128xf32>
    %43 = arith.mulf %42, %5 : vector<128x128xf32>
    %44 = arith.addf %41, %43 : vector<128x128xf32>
    %cst_19 = arith.constant 0.020278573 : f32
    %45 = vector.broadcast %cst_19 : f32 to vector<128x128xf32>
    %46 = arith.mulf %45, %5 : vector<128x128xf32>
    %cst_20 = arith.constant 0.979721426 : f32
    %47 = vector.broadcast %cst_20 : f32 to vector<128x128xf32>
    %48 = arith.mulf %47, %44 : vector<128x128xf32>
    %49 = arith.addf %46, %48 : vector<128x128xf32>
    %cst_21 = arith.constant 0.000000e+00 : f32
    %cst_22 = arith.constant 1.000000e+00 : f32
    %50 = vector.broadcast %cst_21 : f32 to vector<128x128xf32>
    %51 = arith.maximumf %50, %49 : vector<128x128xf32>
    %52 = vector.broadcast %cst_22 : f32 to vector<128x128xf32>
    %53 = arith.minimumf %52, %51 : vector<128x128xf32>
    %54 = tpu.iota {dimensions = array<i32: 0>} : vector<128x128xi32>
    %55 = tpu.iota {dimensions = array<i32: 1>} : vector<128x128xi32>
    %c0_i32_23 = arith.constant 0 : i32
    %56 = vector.broadcast %c0_i32_23 : i32 to vector<128x128xi32>
    %57 = arith.cmpi sgt, %54, %56 : vector<128x128xi32>
    %c127_i32_24 = arith.constant 127 : i32
    %58 = vector.broadcast %c127_i32_24 : i32 to vector<128x128xi32>
    %59 = arith.cmpi slt, %54, %58 : vector<128x128xi32>
    %60 = arith.andi %57, %59 : vector<128x128xi1>
    %c0_i32_25 = arith.constant 0 : i32
    %61 = vector.broadcast %c0_i32_25 : i32 to vector<128x128xi32>
    %62 = arith.cmpi sgt, %55, %61 : vector<128x128xi32>
    %63 = arith.andi %60, %62 : vector<128x128xi1>
    %c127_i32_26 = arith.constant 127 : i32
    %64 = vector.broadcast %c127_i32_26 : i32 to vector<128x128xi32>
    %65 = arith.cmpi slt, %55, %64 : vector<128x128xi32>
    %66 = arith.andi %63, %65 : vector<128x128xi1>
    %67 = arith.select %66, %53, %5 : vector<128x128xi1>, vector<128x128xf32>
    %c0_27 = arith.constant 0 : index
    %c0_28 = arith.constant 0 : index
    %68 = vector.load %arg3[%c0_27, %c0_28] : memref<128x128xf32, #tpu.memory_space<vmem>>, vector<128x128xf32>
    tpu.vector_store %arg3[%c0_27, %c0_28], %67 {strides = array<i32>} : memref<128x128xf32, #tpu.memory_space<vmem>>, vector<128x128xf32>,
    return
  }
}

</mosaic_0001>

<bundles_post_ra>
// kernel: tpu_custom_call.1
= control target key start
LH: loop header
LB: loop body
LE: loop exit
PB: predicated region body
PF: predicated region fallthrough
CT: control target
= control target key end

     0   :  { %vm104_vm0 = vcmask 523264   ;;  %s1756_s0 = inlined_call_operand.vmem [shape: bf16[64,64], index: 0, kind: input, shape index: {}]   ;;  %s1757_s1 = inlined_call_operand.vmem [shape: bf16[128,64], index: 1, kind: input, shape index: {}]   ;;  %s1758_s2 = inlined_call_operand.vmem [shape: bf16[64,128], index: 2, kind: input, shape index: {}]   ;;  %s1759_s3 = inlined_call_operand.hbm [shape: f32[128,128], index: 3, kind: output, shape index: {}]  }
   0x1   :  { %v1161_v0 = vld [vmem:[%s1756_s0] sm:$0xff]   ;;  %v1162_v1 = vld [vmem:[%s1756_s0 + $0x8] sm:$0xff]   ;;  %v1163_v2 = vld [vmem:[%s1756_s0 + $0x10] sm:$0xff]  }
   0x2   :  { %1108 = vmatprep.subr.bf16.mxu0 %v1161_v0  ;;  %v1165_v3 = vld [vmem:[%s1757_s1] sm:$0xff]   ;;  %v1164_v4 = vld [vmem:[%s1756_s0 + $0x18] sm:$0xff]   ;;  %v1166_v5 = vld [vmem:[%s1757_s1 + $0x8] sm:$0xff]  }
   0x3   :  { %1109 = vmatpush3.bf16.msra.mxu0 %v1161_v0  ;;  %1116 = vmatprep.mubr.msk.bf16.mxu0 %vm104_vm0, %v1165_v3  ;;  %v1173_v6 = vld [vmem:[%s1758_s2] sm:$0xff]   ;;  %v1174_v7 = vld [vmem:[%s1758_s2 + $0x8] sm:$0xff]   ;;  %v1167_v8 = vld [vmem:[%s1757_s1 + $0x10] sm:$0xff]  }
   0x4   :  { %1110 = vmatprep.subr.bf16.mxu0 %v1162_v1  ;;  %1132 = vmatprep.subr.bf16.mxu1 %v1173_v6 }
   0x5   :  { %1133 = vmatpush3.bf16.msra.mxu1 %v1173_v6 }
   0x7   :  { %1111 = vmatpush3.bf16.msra.mxu0 %v1162_v1 }
   0x8   :  { %1112 = vmatprep.subr.bf16.mxu0 %v1163_v2 }
   0xb   :  { %1113 = vmatpush3.bf16.msra.mxu0 %v1163_v2 }
   0xc   :  { %1114 = vmatprep.subr.bf16.mxu0 %v1164_v4 }
   0xf   :  { %1115 = vmatpush3.bf16.msra.mxu0 %v1164_v4 }
  0x10   :  { %8 = vsyncpa [#allocation3], 0  ;;  %1134 = vmatprep.subr.bf16.mxu1 %v1174_v7  ;;  %v1175_v9 = vld [vmem:[%s1758_s2 + $0x10] sm:$0xff]   ;;  %v1168_v10 = vld [vmem:[%s1757_s1 + $0x18] sm:$0xff]   ;;  %v387_v40 = vlaneseq  ;;  %s1203_s16 = smov [#allocation2]  }
  0x11   :  { %1135 = vmatpush3.bf16.msra.mxu1 %v1174_v7  ;;  %v1169_v11 = vld [vmem:[%s1757_s1 + $0x20] sm:$0xff]   ;;  %v1170_v12 = vld [vmem:[%s1757_s1 + $0x28] sm:$0xff]   ;;  %v1171_v13 = vld [vmem:[%s1757_s1 + $0x30] sm:$0xff]   ;;  %s1041_s17 = sshll.u32 %s1203_s16, 4  ;;  %s1042_s17 = int_to_ptr.vmem [resolvable:$true] %s1041_s17 }
  0x12   :  { %1117 = vmatmul.mubr.msk.bf16.vlgmr.msra.gmra.mrb[0].mxu0 %vm104_vm0, %v1166_v5  ;;  %1136 = vmatprep.subr.bf16.mxu1 %v1175_v9  ;;  %v1172_v14 = vld [vmem:[%s1757_s1 + $0x38] sm:$0xff]   ;;  %v1290_v41 = vshrl.u32 %v387_v40, 7  ;;  %v1295_v43 = vand.u32 127, %v387_v40  ;;  %s1201_s1 = smov 1   ;;  %s1177_s18 = scalar_lea.vmem %s1042_s17, 2048 }
  0x13   :  { %1120 = vmatprep.mubr.msk.bf16.mxu0 %vm104_vm0, %v1167_v8  ;;  %v1176_v15 = vld [vmem:[%s1758_s2 + $0x18] sm:$0xff]   ;;  %s1202_s2 = smov 127   ;;  %p1178_p0 = scmp.ne.s32.totalorder %s1042_s17, %s1177_s18 }
  0x14   :  { %v1293_v42 = vadd.s32 120, %v1290_v41  ;;  %vm970_vm2 = vcmp.gt.s32.totalorder %v1295_v43, 0  ;;  %vm987_vm4 = vcmp.lt.s32.totalorder %v1295_v43, 127  ;;  %vm420_vm6 = vcmp.lt.s32.totalorder %v1290_v41, 1  ;;  %p1182_p1 = scmp.lt.s32.totalorder %s1042_s17, %s1042_s17  ;;  %p1183_p2 = scmp.lt.s32.totalorder %s1177_s18, %s1177_s18 }
  0x15   :  { %1137 = vmatpush3.bf16.msra.mxu1 %v1175_v9  ;;  %vm453_vm7 = vcmp.lt.s32.totalorder %v1290_v41, 7  ;;  %vm470_vm9 = vcmp.eq.s32.totalorder %v1290_v41, 0  ;;  %vm680_vm10 = vcmp.eq.s32.totalorder %v1295_v43, 0  ;;  %vm697_vm11 = vcmp.eq.s32.totalorder %v1295_v43, 127  ;;  %vm1606_vm12 = vmand %vm970_vm2, %vm987_vm4 }
  0x16   :  { %1138 = vmatprep.subr.bf16.mxu1 %v1176_v15  ;;  %vm953_vm1 = vcmp.lt.s32.totalorder %v1293_v42, 127  ;;  %vm517_vm8 = vcmp.eq.s32.totalorder %v1293_v42, 127  ;;  %vm922_vm13 = vcmp.gt.s32.totalorder %v1290_v41, 0  ;;  %p1184_p3 = por %p1183_p2, %p1182_p1 }
  0x17   :  { %vm986_vm3 = vmand %vm953_vm1, %vm970_vm2 }
  0x18   :  { %vm1304_vm5 = vmand %vm986_vm3, %vm987_vm4  ;;  %p1185_p4 = pnand %p1184_p3, %p1178_p0 }
  0x19   :  { %1139 = vmatpush3.bf16.msra.mxu1 %v1176_v15  ;;  %vm971_vm14 = vmand %vm922_vm13, %vm970_vm2 }
  0x1a   :  { %1121 = vmatmul.mubr.msk.bf16.gmra.mrb[4].mxu0 %vm104_vm0, %v1168_v10  ;;  %vm988_vm15 = vmand %vm971_vm14, %vm987_vm4 }
  0x1b   :  { %1124 = vmatprep.mubr.msk.bf16.mxu0 %vm104_vm0, %v1169_v11 }
  0x22   :  { %1125 = vmatmul.mubr.msk.bf16.gmra.mrb[8].mxu0 %vm104_vm0, %v1170_v12 }
  0x23   :  { %1128 = vmatprep.mubr.msk.bf16.mxu0 %vm104_vm0, %v1171_v13 }
  0x2a   :  { %1129 = vmatmul.mubr.msk.bf16.gmra.mrb[12].mxu0 %vm104_vm0, %v1172_v14 }
  0xe5   :  { %v1118_v16 = vpop.f32.mrb[0].mxu0 }
  0xe6   :  { %v163_v17 = vpop.f32.mrb[1].mxu0 }
  0xe7   :  { %v1119_v18 = vpop.f32.mrb[2].mxu0 }
  0xe8   :  { %v227_v19 = vpack.c.bf16 %v1119_v18, %v1118_v16  ;;  %v166_v20 = vpop.f32.mrb[3].mxu0 }
  0xe9   :  { %v226_v21 = vpack.c.bf16 %v166_v20, %v163_v17 }
  0xeb   :  { %1140 = vmatprep.mubr.msk.bf16.mxu1 %vm104_vm0, %v226_v21 }
  0xec   :  { %1141 = vmatmul.mubr.msk.bf16.vlgmr.msra.gmra.mrb[0].mxu1 %vm104_vm0, %v227_v19 }
  0xed   :  { %v1122_v22 = vpop.f32.mrb[4].mxu0 }
  0xee   :  { %v179_v23 = vpop.f32.mrb[5].mxu0 }
  0xef   :  { %v1123_v24 = vpop.f32.mrb[6].mxu0 }
  0xf0   :  { %v229_v25 = vpack.c.bf16 %v1123_v24, %v1122_v22  ;;  %v182_v26 = vpop.f32.mrb[7].mxu0 }
  0xf1   :  { %v228_v27 = vpack.c.bf16 %v182_v26, %v179_v23 }
  0xf3   :  { %1144 = vmatprep.mubr.msk.bf16.mxu1 %vm104_vm0, %v228_v27 }
  0xf4   :  { %1145 = vmatmul.mubr.msk.bf16.gmra.mrb[4].mxu1 %vm104_vm0, %v229_v25 }
  0xf5   :  { %v1126_v28 = vpop.f32.mrb[8].mxu0 }
  0xf6   :  { %v195_v29 = vpop.f32.mrb[9].mxu0 }
  0xf7   :  { %v1127_v30 = vpop.f32.mrb[10].mxu0 }
  0xf8   :  { %v231_v31 = vpack.c.bf16 %v1127_v30, %v1126_v28  ;;  %v198_v32 = vpop.f32.mrb[11].mxu0 }
  0xf9   :  { %v230_v33 = vpack.c.bf16 %v198_v32, %v195_v29 }
  0xfb   :  { %1148 = vmatprep.mubr.msk.bf16.mxu1 %vm104_vm0, %v230_v33 }
  0xfc   :  { %1149 = vmatmul.mubr.msk.bf16.gmra.mrb[8].mxu1 %vm104_vm0, %v231_v31 }
  0xfd   :  { %v1130_v34 = vpop.f32.mrb[12].mxu0 }
  0xfe   :  { %v211_v35 = vpop.f32.mrb[13].mxu0 }
  0xff   :  { %v1131_v36 = vpop.f32.mrb[14].mxu0 }
 0x100   :  { %v233_v37 = vpack.c.bf16 %v1131_v36, %v1130_v34  ;;  %v214_v38 = vpop.f32.mrb[15].mxu0 }
 0x101   :  { %v232_v39 = vpack.c.bf16 %v214_v38, %v211_v35 }
 0x103   :  { %1152 = vmatprep.mubr.msk.bf16.mxu1 %vm104_vm0, %v232_v39 }
 0x104   :  { %1153 = vmatmul.mubr.msk.bf16.gmra.mrb[12].mxu1 %vm104_vm0, %v233_v37 }
 0x1bf   :  { %v1308_v45 = vpop.f32.mrb[0].mxu1 }
 0x1c0   :  { %v1310_v46 = vpop.f32.mrb[1].mxu1  ;;  %v406_v47 = vrot.slane %v1308_v45, 7  ;;  %v439_v51 = vrot.slane %v1308_v45, 1  ;;  %v552_v53 = vmul.f32 0.33333334, %v1308_v45 }
 0x1c1   :  { %v1313_v48 = vpop.f32.mrb[2].mxu1  ;;  %v404_v54 = vrot.slane %v1310_v46, 7  ;;  %v437_v55 = vrot.slane %v1310_v46, 1  ;;  %v1333_v61 = vmul.f32 0.33333334, %v1310_v46 }
 0x1c2   :  { %v407_v49 = vrot.slane %v1313_v48, 7  ;;  %v1318_v50 = vpop.f32.mrb[3].mxu1  ;;  %v440_v52 = vrot.slane %v1313_v48, 1  ;;  %v553_v60 = vmul.f32 0.33333334, %v1313_v48 }
 0x1c3   :  { %v405_v56 = vrot.slane %v1318_v50, 7  ;;  %v438_v57 = vrot.slane %v1318_v50, 1  ;;  %v551_v0 = vmul.f32 0.33333334, %v1318_v50 }
 0x1c4   :  { %v466_v58 = vsel %vm453_vm7, %v439_v51, %v440_v52  ;;  %v433_v59 = vsel %vm420_vm6, %v406_v47, %v407_v49 }
 0x1c5   :  { %v435_v62 = vsel %vm420_vm6, %v404_v54, %v405_v56  ;;  %v467_v63 = vsel %vm453_vm7, %v438_v57, %v439_v51  ;;  %v434_v1 = vsel %vm420_vm6, %v405_v56, %v406_v47  ;;  %v584_v4 = vmul.f32 0.33333334, %v466_v58 }
 0x1c6   :  { %v535_v2 = vmul.f32 0.33333334, %v435_v62  ;;  %v536_v3 = vmul.f32 0.33333334, %v434_v1  ;;  %v1348_v5 = vsel %vm453_vm7, %v437_v55, %v438_v57  ;;  %v583_v7 = vmul.f32 0.33333334, %v467_v63 }
 0x1c7   :  { %v1350_v6 = vpop.f32.mrb[4].mxu1  ;;  %v537_v8 = vmul.f32 0.33333334, %v433_v59 }
 0x1c8   :  { %v410_v9 = vrot.slane %v1350_v6, 7  ;;  %v1353_v10 = vpop.f32.mrb[5].mxu1  ;;  %v567_v11 = vadd.f32 %v551_v0, %v535_v2  ;;  %v568_v12 = vadd.f32 %v552_v53, %v536_v3  ;;  %v443_v13 = vrot.slane %v1350_v6, 1 }
 0x1c9   :  { %v408_v14 = vrot.slane %v1353_v10, 7  ;;  %v1357_v15 = vpop.f32.mrb[6].mxu1  ;;  %v441_v16 = vrot.slane %v1353_v10, 1  ;;  %v569_v17 = vadd.f32 %v553_v60, %v537_v8  ;;  %v554_v18 = vmul.f32 0.33333334, %v1353_v10 }
 0x1ca   :  { %v411_v19 = vrot.slane %v1357_v15, 7  ;;  %v1362_v20 = vpop.f32.mrb[7].mxu1  ;;  %v1364_v21 = vadd.f32 %v583_v7, %v567_v11  ;;  %v1366_v22 = vadd.f32 %v584_v4, %v568_v12  ;;  %v444_v23 = vrot.slane %v1357_v15, 1 }
 0x1cb   :  { %v409_v24 = vrot.slane %v1362_v20, 7  ;;  %v465_v25 = vsel %vm453_vm7, %v440_v52, %v441_v16  ;;  %v432_v26 = vsel %vm420_vm6, %v407_v49, %v408_v14  ;;  %v442_v27 = vrot.slane %v1362_v20, 1 }
 0x1cc   :  { %618 = vrot.lane.b32.xlu0 %v1364_v21, %s1201_s1  ;;  %620 = vrot.lane.b32.xlu1 %v1366_v22, %s1201_s1  ;;  %v585_v28 = vmul.f32 0.33333334, %v465_v25  ;;  %v538_v29 = vmul.f32 0.33333334, %v432_v26  ;;  %v555_v30 = vmul.f32 0.33333334, %v1362_v20  ;;  %v462_v31 = vsel %vm453_vm7, %v443_v13, %v444_v23 }
 0x1cd   :  { %v464_v32 = vsel %vm453_vm7, %v441_v16, %v442_v27  ;;  %v431_v33 = vsel %vm420_vm6, %v408_v14, %v409_v24  ;;  %v463_v34 = vsel %vm453_vm7, %v442_v27, %v443_v13  ;;  %v430_v35 = vsel %vm420_vm6, %v409_v24, %v410_v9 }
 0x1ce   :  { %v1390_v36 = vadd.f32 %v585_v28, %v569_v17  ;;  %v570_v37 = vadd.f32 %v554_v18, %v538_v29  ;;  %v586_v38 = vmul.f32 0.33333334, %v464_v32  ;;  %v539_v39 = vmul.f32 0.33333334, %v431_v33 }
 0x1cf   :  { %v1392_v40 = vpop.f32.mrb[8].mxu1  ;;  %v587_v47 = vmul.f32 0.33333334, %v463_v34  ;;  %v540_v49 = vmul.f32 0.33333334, %v430_v35  ;;  %v429_v51 = vsel %vm420_vm6, %v410_v9, %v411_v19 }
 0x1d0   :  { %v414_v52 = vrot.slane %v1392_v40, 7  ;;  %652 = vrot.lane.b32.xlu0 %v1366_v22, %s1202_s2  ;;  %650 = vrot.lane.b32.xlu1 %v1364_v21, %s1202_s2  ;;  %v1401_v53 = vpop.f32.mrb[9].mxu1  ;;  %v1403_v56 = vadd.f32 %v586_v38, %v570_v37  ;;  %v571_v57 = vadd.f32 %v555_v30, %v539_v39  ;;  %v556_v58 = vmul.f32 0.33333334, %v1350_v6 }
 0x1d1   :  { %v412_v59 = vrot.slane %v1401_v53, 7  ;;  %v1407_v60 = vpop.f32.mrb[10].mxu1  ;;  %v588_v62 = vmul.f32 0.33333334, %v462_v31  ;;  %v445_v63 = vrot.slane %v1401_v53, 1  ;;  %v447_v0 = vrot.slane %v1392_v40, 1 }
 0x1d2   :  { %v415_v1 = vrot.slane %v1407_v60, 7  ;;  %v1412_v2 = vpop.f32.mrb[11].mxu1  ;;  %v1414_v3 = vadd.f32 %v587_v47, %v571_v57  ;;  %v572_v4 = vadd.f32 %v556_v58, %v540_v49  ;;  %v541_v7 = vmul.f32 0.33333334, %v429_v51 }
 0x1d3   :  { %v413_v8 = vrot.slane %v1412_v2, 7  ;;  %v461_v9 = vsel %vm453_vm7, %v444_v23, %v445_v63  ;;  %v557_v11 = vmul.f32 0.33333334, %v1357_v15  ;;  %v428_v12 = vsel %vm420_vm6, %v411_v19, %v412_v59 }
 0x1d4   :  { %622 = vrot.lane.b32.xlu1 %v1390_v36, %s1201_s1  ;;  %624 = vrot.lane.b32.xlu0 %v1403_v56, %s1201_s1  ;;  %v1426_v13 = vadd.f32 %v588_v62, %v572_v4  ;;  %v589_v14 = vmul.f32 0.33333334, %v461_v9  ;;  %v446_v16 = vrot.slane %v1412_v2, 1  ;;  %v542_v17 = vmul.f32 0.33333334, %v428_v12 }
 0x1d5   :  { %v573_v18 = vadd.f32 %v557_v11, %v541_v7  ;;  %v558_v23 = vmul.f32 0.33333334, %v1401_v53  ;;  %v427_v24 = vsel %vm420_vm6, %v412_v59, %v413_v8  ;;  %v559_v19 = vmul.f32 0.33333334, %v1412_v2 }
 0x1d6   :  { %v460_v25 = vsel %vm453_vm7, %v445_v63, %v446_v16  ;;  %v459_v26 = vsel %vm453_vm7, %v446_v16, %v447_v0  ;;  %v543_v27 = vmul.f32 0.33333334, %v427_v24  ;;  %v426_v28 = vsel %vm420_vm6, %v413_v8, %v414_v52 }
 0x1d7   :  { %v1441_v29 = vpop.f32.mrb[12].mxu1  ;;  %v1443_v30 = vadd.f32 %v589_v14, %v573_v18  ;;  %v574_v31 = vadd.f32 %v558_v23, %v542_v17  ;;  %v590_v32 = vmul.f32 0.33333334, %v460_v25  ;;  %v591_v33 = vmul.f32 0.33333334, %v459_v26 }
 0x1d8   :  { %v418_v34 = vrot.slane %v1441_v29, 7  ;;  %654 = vrot.lane.b32.xlu1 %v1390_v36, %s1202_s2  ;;  %656 = vrot.lane.b32.xlu0 %v1403_v56, %s1202_s2  ;;  %v1450_v35 = vpop.f32.mrb[13].mxu1  ;;  %v575_v37 = vadd.f32 %v559_v19, %v543_v27  ;;  %v448_v38 = vrot.slane %v1407_v60, 1  ;;  %v544_v39 = vmul.f32 0.33333334, %v426_v28 }
 0x1d9   :  { %v416_v47 = vrot.slane %v1450_v35, 7  ;;  %v1454_v49 = vpop.f32.mrb[14].mxu1  ;;  %v1456_v51 = vadd.f32 %v590_v32, %v574_v31  ;;  %v560_v57 = vmul.f32 0.33333334, %v1392_v40  ;;  %v425_v58 = vsel %vm420_vm6, %v414_v52, %v415_v1 }
 0x1da   :  { %v419_v59 = vrot.slane %v1454_v49, 7  ;;  %v452_v62 = vrot.slane %v1454_v49, 1  ;;  %v1463_v63 = vpop.f32.mrb[15].mxu1  ;;  %v1465_v4 = vadd.f32 %v591_v33, %v575_v37  ;;  %v458_v7 = vsel %vm453_vm7, %v447_v0, %v448_v38 }
 0x1db   :  { %v417_v8 = vrot.slane %v1463_v63, 7  ;;  %v450_v9 = vrot.slane %v1463_v63, 1  ;;  %v576_v11 = vadd.f32 %v560_v57, %v544_v39  ;;  %v582_v12 = vmul.f32 0.33333334, %v1348_v5 }
 0x1dc   :  { %626 = vrot.lane.b32.xlu1 %v1414_v3, %s1201_s1  ;;  %628 = vrot.lane.b32.xlu0 %v1426_v13, %s1201_s1  ;;  %v592_v52 = vmul.f32 0.33333334, %v458_v7  ;;  %v449_v14 = vrot.slane %v1450_v35, 1  ;;  %v545_v16 = vmul.f32 0.33333334, %v425_v58  ;;  %v424_v0 = vsel %vm420_vm6, %v415_v1, %v416_v47 }
 0x1dd   :  { %v561_v17 = vmul.f32 0.33333334, %v1407_v60  ;;  %v546_v18 = vmul.f32 0.33333334, %v424_v0  ;;  %v562_v23 = vmul.f32 0.33333334, %v1450_v35  ;;  %v421_v24 = vsel %vm420_vm6, %v418_v34, %v419_v59 }
 0x1de   :  { %v1483_v19 = vadd.f32 %v592_v52, %v576_v11  ;;  %v457_v25 = vsel %vm453_vm7, %v448_v38, %v449_v14  ;;  %v456_v26 = vsel %vm453_vm7, %v449_v14, %v450_v9  ;;  %v469_v1 = vsel %vm453_vm7, %v452_v62, %v437_v55 }
 0x1df   :  { %v577_v27 = vadd.f32 %v561_v17, %v545_v16  ;;  %v593_v28 = vmul.f32 0.33333334, %v457_v25  ;;  %v578_v31 = vadd.f32 %v562_v23, %v546_v18  ;;  %v594_v32 = vmul.f32 0.33333334, %v456_v26 }
 0x1e0   :  { %658 = vrot.lane.b32.xlu1 %v1414_v3, %s1202_s2  ;;  %660 = vrot.lane.b32.xlu0 %v1426_v13, %s1202_s2  ;;  %v533_v33 = vsel %vm517_vm8, %v421_v24, %v469_v1  ;;  %v549_v37 = vmul.f32 0.33333334, %v421_v24  ;;  %v565_v38 = vmul.f32 0.33333334, %v1454_v49  ;;  %v436_v55 = vsel %vm420_vm6, %v419_v59, %v404_v54 }
 0x1e1   :  { %v1504_v39 = vadd.f32 %v593_v28, %v577_v27  ;;  %v1506_v57 = vadd.f32 %v594_v32, %v578_v31  ;;  %v597_v58 = vmul.f32 0.33333334, %v533_v33  ;;  %v486_v7 = vsel %vm470_vm9, %v1348_v5, %v436_v55 }
 0x1e2   :  { %v581_v11 = vadd.f32 %v565_v38, %v549_v37  ;;  %v534_v42 = vmul.f32 0.33333334, %v486_v7  ;;  %v423_v52 = vsel %vm420_vm6, %v416_v47, %v417_v8  ;;  %v451_v14 = vrot.slane %v1441_v29, 1 }
 0x1e3   :  { %v547_v16 = vmul.f32 0.33333334, %v423_v52  ;;  %v563_v0 = vmul.f32 0.33333334, %v1463_v63  ;;  %v422_v54 = vsel %vm420_vm6, %v417_v8, %v418_v34  ;;  %v564_v59 = vmul.f32 0.33333334, %v1441_v29 }
 0x1e4   :  { %630 = vrot.lane.b32.xlu1 %v1443_v30, %s1201_s1  ;;  %632 = vrot.lane.b32.xlu0 %v1456_v51, %s1201_s1  ;;  %v1522_v5 = vadd.f32 %v597_v58, %v581_v11  ;;  %v566_v47 = vadd.f32 %v1333_v61, %v534_v42  ;;  %v455_v17 = vsel %vm453_vm7, %v450_v9, %v451_v14  ;;  %v548_v18 = vmul.f32 0.33333334, %v422_v54 }
 0x1e5   :  { %v579_v23 = vadd.f32 %v563_v0, %v547_v16  ;;  %v595_v24 = vmul.f32 0.33333334, %v455_v17  ;;  %v454_v34 = vsel %vm453_vm7, %v451_v14, %v452_v62  ;;  %v732_v27 = vmul.f32 0.33333334, %v1366_v22 }
 0x1e6   :  { %v1529_v8 = vadd.f32 %v582_v12, %v566_v47  ;;  %v580_v25 = vadd.f32 %v564_v59, %v548_v18  ;;  %v596_v26 = vmul.f32 0.33333334, %v454_v34  ;;  %v731_v55 = vmul.f32 0.33333334, %v1364_v21 }
 0x1e7   :  { %v1531_v1 = vadd.f32 %v595_v24, %v579_v23  ;;  %v812_v54 = vmul.f32 0.30769232, %v1308_v45  ;;  %v844_v59 = vmul.f32 0.020278573, %v1308_v45  ;;  %v811_v17 = vmul.f32 0.30769232, %v1318_v50 }
 0x1e8   :  { %662 = vrot.lane.b32.xlu1 %v1443_v30, %s1202_s2  ;;  %664 = vrot.lane.b32.xlu0 %v1456_v51, %s1202_s2  ;;  %v1537_v61 = vadd.f32 %v596_v26, %v580_v25  ;;  %v733_v25 = vmul.f32 0.33333334, %v1390_v36 }
 0x1ec   :  { %634 = vrot.lane.b32.xlu1 %v1465_v4, %s1201_s1  ;;  %636 = vrot.lane.b32.xlu0 %v1483_v19, %s1201_s1 }
 0x1f0   :  { %666 = vrot.lane.b32.xlu1 %v1465_v4, %s1202_s2  ;;  %668 = vrot.lane.b32.xlu0 %v1483_v19, %s1202_s2 }
 0x1f4   :  { %638 = vrot.lane.b32.xlu1 %v1504_v39, %s1201_s1  ;;  %640 = vrot.lane.b32.xlu0 %v1506_v57, %s1201_s1 }
 0x1f8   :  { %670 = vrot.lane.b32.xlu1 %v1504_v39, %s1202_s2  ;;  %672 = vrot.lane.b32.xlu0 %v1506_v57, %s1202_s2 }
 0x1fc   :  { %646 = vrot.lane.b32.xlu1 %v1522_v5, %s1201_s1  ;;  %616 = vrot.lane.b32.xlu0 %v1529_v8, %s1201_s1 }
 0x200   :  { %642 = vrot.lane.b32.xlu1 %v1531_v1, %s1201_s1  ;;  %644 = vrot.lane.b32.xlu0 %v1537_v61, %s1201_s1 }
 0x204   :  { %674 = vrot.lane.b32.xlu1 %v1531_v1, %s1202_s2  ;;  %648 = vrot.lane.b32.xlu0 %v1529_v8, %s1202_s2 }
 0x208   :  { %678 = vrot.lane.b32.xlu1 %v1522_v5, %s1202_s2  ;;  %676 = vrot.lane.b32.xlu0 %v1537_v61, %s1202_s2 }
 0x23e   :  { %v619_v62 = vpop.permute.xlu0 %618  ;;  %v621_v9 = vpop.permute.xlu1 %620 }
 0x242   :  { %v653_v12 = vpop.permute.xlu0 %652  ;;  %v651_v28 = vpop.permute.xlu1 %650 }
 0x243   :  { %v683_v31 = vsel %vm680_vm10, %v653_v12, %v621_v9  ;;  %v700_v32 = vsel %vm697_vm11, %v621_v9, %v653_v12  ;;  %v682_v33 = vsel %vm680_vm10, %v651_v28, %v619_v62  ;;  %v699_v37 = vsel %vm697_vm11, %v619_v62, %v651_v28 }
 0x244   :  { %v716_v38 = vmul.f32 0.33333334, %v683_v31  ;;  %v715_v58 = vmul.f32 0.33333334, %v682_v33  ;;  %v764_v11 = vmul.f32 0.33333334, %v700_v32 }
 0x245   :  { %v763_v42 = vmul.f32 0.33333334, %v699_v37  ;;  %v843_v28 = vmul.f32 0.020278573, %v1318_v50  ;;  %v734_v32 = vmul.f32 0.33333334, %v1403_v56 }
 0x246   :  { %v748_v7 = vadd.f32 %v732_v27, %v716_v38  ;;  %v747_v22 = vadd.f32 %v731_v55, %v715_v58  ;;  %v623_v52 = vpop.permute.xlu1 %622  ;;  %v625_v14 = vpop.permute.xlu0 %624  ;;  %v735_v56 = vmul.f32 0.33333334, %v1414_v3 }
 0x248   :  { %v780_v16 = vadd.f32 %v764_v11, %v748_v7  ;;  %v779_v0 = vadd.f32 %v763_v42, %v747_v22 }
 0x24a   :  { %v796_v47 = vmul.f32 0.6923077, %v780_v16  ;;  %v795_v18 = vmul.f32 0.6923077, %v779_v0  ;;  %v655_v23 = vpop.permute.xlu1 %654  ;;  %v657_v24 = vpop.permute.xlu0 %656  ;;  %v814_v0 = vmul.f32 0.30769232, %v1353_v10 }
 0x24b   :  { %v684_v21 = vsel %vm680_vm10, %v655_v23, %v623_v52  ;;  %v701_v34 = vsel %vm697_vm11, %v623_v52, %v655_v23  ;;  %v685_v26 = vsel %vm680_vm10, %v657_v24, %v625_v14  ;;  %v702_v27 = vsel %vm697_vm11, %v625_v14, %v657_v24 }
 0x24c   :  { %v828_v62 = vadd.f32 %v812_v54, %v796_v47  ;;  %v827_v9 = vadd.f32 %v811_v17, %v795_v18  ;;  %v717_v12 = vmul.f32 0.33333334, %v684_v21  ;;  %v718_v31 = vmul.f32 0.33333334, %v685_v26 }
 0x24d   :  { %v765_v55 = vmul.f32 0.33333334, %v701_v34  ;;  %v766_v11 = vmul.f32 0.33333334, %v702_v27  ;;  %v813_v52 = vmul.f32 0.30769232, %v1313_v48 }
 0x24e   :  { %v860_v33 = vmul.f32 0.9797214, %v828_v62  ;;  %v859_v37 = vmul.f32 0.9797214, %v827_v9  ;;  %v749_v38 = vadd.f32 %v733_v25, %v717_v12  ;;  %v627_v58 = vpop.permute.xlu1 %626  ;;  %v629_v36 = vpop.permute.xlu0 %628  ;;  %v750_v7 = vadd.f32 %v734_v32, %v718_v31 }
 0x24f   :  { %v845_v14 = vmul.f32 0.020278573, %v1313_v48  ;;  %v736_v21 = vmul.f32 0.33333334, %v1426_v13 }
 0x250   :  { %v876_v22 = vadd.f32 %v860_v33, %v844_v59  ;;  %v875_v42 = vadd.f32 %v859_v37, %v843_v28  ;;  %v781_v16 = vadd.f32 %v765_v55, %v749_v38  ;;  %v782_v54 = vadd.f32 %v766_v11, %v750_v7 }
 0x251   :  { %v846_v11 = vmul.f32 0.020278573, %v1353_v10 }
 0x252   :  { %v892_v47 = vmax.f32 %v876_v22, 0.0  ;;  %v891_v17 = vmax.f32 %v875_v42, 0.0  ;;  %v797_v18 = vmul.f32 0.6923077, %v781_v16  ;;  %v659_v23 = vpop.permute.xlu1 %658  ;;  %v661_v24 = vpop.permute.xlu0 %660  ;;  %v798_v34 = vmul.f32 0.6923077, %v782_v54 }
 0x253   :  { %v686_v25 = vsel %vm680_vm10, %v659_v23, %v627_v58  ;;  %v703_v3 = vsel %vm697_vm11, %v627_v58, %v659_v23  ;;  %v687_v26 = vsel %vm680_vm10, %v661_v24, %v629_v36  ;;  %v704_v31 = vsel %vm697_vm11, %v629_v36, %v661_v24 }
 0x254   :  { %v908_v62 = vmin.f32 %v892_v47, 1.0  ;;  %v907_v13 = vmin.f32 %v891_v17, 1.0  ;;  %v829_v9 = vadd.f32 %v813_v52, %v797_v18  ;;  %v719_v12 = vmul.f32 0.33333334, %v686_v25 }
 0x255   :  { %v830_v27 = vadd.f32 %v814_v0, %v798_v34  ;;  %v767_v28 = vmul.f32 0.33333334, %v703_v3  ;;  %v720_v32 = vmul.f32 0.33333334, %v687_v26  ;;  %v768_v36 = vmul.f32 0.33333334, %v704_v31 }
 0x256   :  { %v1006_v33 = vsel %vm1606_vm12, %v908_v62, %v1308_v45  ;;  %v1005_v37 = vsel %vm1606_vm12, %v907_v13, %v1318_v50  ;;  %v861_v38 = vmul.f32 0.9797214, %v829_v9  ;;  %v751_v55 = vadd.f32 %v735_v56, %v719_v12  ;;  %v631_v58 = vpop.permute.xlu1 %630  ;;  %v633_v7 = vpop.permute.xlu0 %632 }
 0x257   :  { %1022 = vst [vmem:[#allocation2 + $0x10] sm:$0xff] %v1006_v33  ;;  %1021 = vst [vmem:[#allocation2 + $0x8] sm:$0xff] %v1005_v37  ;;  %v862_v22 = vmul.f32 0.9797214, %v830_v27  ;;  %v752_v42 = vadd.f32 %v736_v21, %v720_v32  ;;  %v815_v16 = vmul.f32 0.30769232, %v1362_v20 }
 0x258   :  { %v877_v52 = vadd.f32 %v861_v38, %v845_v14  ;;  %v847_v45 = vmul.f32 0.020278573, %v1362_v20  ;;  %v783_v0 = vadd.f32 %v767_v28, %v751_v55  ;;  %v816_v50 = vmul.f32 0.30769232, %v1350_v6 }
 0x259   :  { %v878_v54 = vadd.f32 %v862_v22, %v846_v11  ;;  %v784_v47 = vadd.f32 %v768_v36, %v752_v42  ;;  %v737_v56 = vmul.f32 0.33333334, %v1443_v30  ;;  %v738_v34 = vmul.f32 0.33333334, %v1456_v51 }
 0x25a   :  { %v893_v17 = vmax.f32 %v877_v52, 0.0  ;;  %v799_v18 = vmul.f32 0.6923077, %v783_v0  ;;  %v663_v23 = vpop.permute.xlu1 %662  ;;  %v665_v24 = vpop.permute.xlu0 %664  ;;  %v817_v22 = vmul.f32 0.30769232, %v1357_v15 }
 0x25b   :  { %v894_v21 = vmax.f32 %v878_v54, 0.0  ;;  %v800_v25 = vmul.f32 0.6923077, %v784_v47  ;;  %v688_v14 = vsel %vm680_vm10, %v663_v23, %v631_v58  ;;  %v705_v3 = vsel %vm697_vm11, %v631_v58, %v663_v23 }
 0x25c   :  { %v909_v26 = vmin.f32 %v893_v17, 1.0  ;;  %v831_v62 = vadd.f32 %v815_v16, %v799_v18  ;;  %v721_v13 = vmul.f32 0.33333334, %v688_v14  ;;  %v769_v9 = vmul.f32 0.33333334, %v705_v3 }
 0x25d   :  { %v910_v12 = vmin.f32 %v894_v21, 1.0  ;;  %v832_v30 = vadd.f32 %v816_v50, %v800_v25  ;;  %v689_v27 = vsel %vm680_vm10, %v665_v24, %v633_v7  ;;  %v706_v51 = vsel %vm697_vm11, %v633_v7, %v665_v24 }
 0x25e   :  { %v1007_v28 = vsel %vm1606_vm12, %v909_v26, %v1313_v48  ;;  %v863_v31 = vmul.f32 0.9797214, %v831_v62  ;;  %v753_v32 = vadd.f32 %v737_v56, %v721_v13  ;;  %v722_v33 = vmul.f32 0.33333334, %v689_v27  ;;  %v635_v37 = vpop.permute.xlu1 %634  ;;  %v637_v38 = vpop.permute.xlu0 %636 }
 0x25f   :  { %1023 = vst [vmem:[#allocation2 + $0x18] sm:$0xff] %v1007_v28  ;;  %v1008_v55 = vsel %vm1606_vm12, %v910_v12, %v1353_v10  ;;  %v848_v58 = vmul.f32 0.020278573, %v1350_v6  ;;  %v864_v11 = vmul.f32 0.9797214, %v832_v30 }
 0x260   :  { %1024 = vst [vmem:[#allocation2 + $0x20] sm:$0xff] %v1008_v55  ;;  %v879_v7 = vadd.f32 %v863_v31, %v847_v45  ;;  %v785_v42 = vadd.f32 %v769_v9, %v753_v32  ;;  %v754_v36 = vadd.f32 %v738_v34, %v722_v33  ;;  %v770_v48 = vmul.f32 0.33333334, %v706_v51 }
 0x261   :  { %v880_v52 = vadd.f32 %v864_v11, %v848_v58  ;;  %v849_v16 = vmul.f32 0.020278573, %v1357_v15  ;;  %v818_v0 = vmul.f32 0.30769232, %v1401_v53  ;;  %v739_v54 = vmul.f32 0.33333334, %v1465_v4 }
 0x262   :  { %v895_v50 = vmax.f32 %v879_v7, 0.0  ;;  %v801_v47 = vmul.f32 0.6923077, %v785_v42  ;;  %v786_v10 = vadd.f32 %v770_v48, %v754_v36  ;;  %v667_v56 = vpop.permute.xlu1 %666  ;;  %v669_v17 = vpop.permute.xlu0 %668  ;;  %v740_v18 = vmul.f32 0.33333334, %v1483_v19 }
 0x263   :  { %v896_v23 = vmax.f32 %v880_v52, 0.0  ;;  %v690_v45 = vsel %vm680_vm10, %v667_v56, %v635_v37  ;;  %v707_v24 = vsel %vm697_vm11, %v635_v37, %v667_v56  ;;  %v691_v34 = vsel %vm680_vm10, %v669_v17, %v637_v38 }
 0x264   :  { %v911_v21 = vmin.f32 %v895_v50, 1.0  ;;  %v833_v25 = vadd.f32 %v817_v22, %v801_v47  ;;  %v802_v4 = vmul.f32 0.6923077, %v786_v10  ;;  %v723_v14 = vmul.f32 0.33333334, %v690_v45 }
 0x265   :  { %v912_v3 = vmin.f32 %v896_v23, 1.0  ;;  %v771_v26 = vmul.f32 0.33333334, %v707_v24  ;;  %v708_v62 = vsel %vm697_vm11, %v637_v38, %v669_v17  ;;  %v724_v19 = vmul.f32 0.33333334, %v691_v34 }
 0x266   :  { %v1009_v13 = vsel %vm1606_vm12, %v911_v21, %v1362_v20  ;;  %v865_v9 = vmul.f32 0.9797214, %v833_v25  ;;  %v834_v12 = vadd.f32 %v818_v0, %v802_v4  ;;  %v755_v30 = vadd.f32 %v739_v54, %v723_v14  ;;  %v639_v27 = vpop.permute.xlu1 %638  ;;  %v641_v51 = vpop.permute.xlu0 %640 }
 0x267   :  { %1025 = vst [vmem:[#allocation2 + $0x28] sm:$0xff] %v1009_v13  ;;  %v1010_v28 = vsel %vm1606_vm12, %v912_v3, %v1350_v6  ;;  %v850_v31 = vmul.f32 0.020278573, %v1401_v53  ;;  %v756_v32 = vadd.f32 %v740_v18, %v724_v19  ;;  %v772_v33 = vmul.f32 0.33333334, %v708_v62 }
 0x268   :  { %1026 = vst [vmem:[#allocation2 + $0x30] sm:$0xff] %v1010_v28  ;;  %v881_v37 = vadd.f32 %v865_v9, %v849_v16  ;;  %v866_v38 = vmul.f32 0.9797214, %v834_v12  ;;  %v819_v55 = vmul.f32 0.30769232, %v1412_v2  ;;  %v787_v20 = vadd.f32 %v771_v26, %v755_v30 }
 0x269   :  { %v851_v58 = vmul.f32 0.020278573, %v1412_v2  ;;  %v820_v11 = vmul.f32 0.30769232, %v1392_v40  ;;  %v788_v22 = vadd.f32 %v772_v33, %v756_v32  ;;  %v741_v7 = vmul.f32 0.33333334, %v1504_v39 }
 0x26a   :  { %v897_v42 = vmax.f32 %v881_v37, 0.0  ;;  %v882_v36 = vadd.f32 %v866_v38, %v850_v31  ;;  %v803_v6 = vmul.f32 0.6923077, %v787_v20  ;;  %v671_v48 = vpop.permute.xlu1 %670  ;;  %v673_v52 = vpop.permute.xlu0 %672  ;;  %v742_v0 = vmul.f32 0.33333334, %v1506_v57 }
 0x26b   :  { %v804_v54 = vmul.f32 0.6923077, %v788_v22  ;;  %v692_v16 = vsel %vm680_vm10, %v671_v48, %v639_v27  ;;  %v709_v50 = vsel %vm697_vm11, %v639_v27, %v671_v48  ;;  %v693_v47 = vsel %vm680_vm10, %v673_v52, %v641_v51 }
 0x26c   :  { %v913_v10 = vmin.f32 %v897_v42, 1.0  ;;  %v898_v56 = vmax.f32 %v882_v36, 0.0  ;;  %v835_v39 = vadd.f32 %v819_v55, %v803_v6  ;;  %v725_v17 = vmul.f32 0.33333334, %v692_v16 }
 0x26d   :  { %v836_v18 = vadd.f32 %v820_v11, %v804_v54  ;;  %v773_v23 = vmul.f32 0.33333334, %v709_v50  ;;  %v710_v45 = vsel %vm697_vm11, %v641_v51, %v673_v52  ;;  %v726_v57 = vmul.f32 0.33333334, %v693_v47 }
 0x26e   :  { %v1011_v24 = vsel %vm1606_vm12, %v913_v10, %v1357_v15  ;;  %v914_v34 = vmin.f32 %v898_v56, 1.0  ;;  %v867_v21 = vmul.f32 0.9797214, %v835_v39  ;;  %v757_v25 = vadd.f32 %v741_v7, %v725_v17  ;;  %v647_v4 = vpop.permute.xlu1 %646  ;;  %v617_v14 = vpop.permute.xlu0 %616 }
 0x26f   :  { %1027 = vst [vmem:[#allocation2 + $0x38] sm:$0xff] %v1011_v24  ;;  %v852_v3 = vmul.f32 0.020278573, %v1392_v40  ;;  %v868_v26 = vmul.f32 0.9797214, %v836_v18  ;;  %v758_v62 = vadd.f32 %v742_v0, %v726_v57 }
 0x270   :  { %v774_v19 = vmul.f32 0.33333334, %v710_v45  ;;  %v1012_v13 = vsel %vm1606_vm12, %v914_v34, %v1401_v53  ;;  %v883_v9 = vadd.f32 %v867_v21, %v851_v58  ;;  %v789_v12 = vadd.f32 %v773_v23, %v757_v25 }
 0x271   :  { %1028 = vst [vmem:[#allocation2 + $0x40] sm:$0xff] %v1012_v13  ;;  %v884_v30 = vadd.f32 %v868_v26, %v852_v3  ;;  %v821_v51 = vmul.f32 0.30769232, %v1407_v60  ;;  %v822_v37 = vmul.f32 0.30769232, %v1450_v35 }
 0x272   :  { %v790_v15 = vadd.f32 %v774_v19, %v758_v62  ;;  %v899_v27 = vmax.f32 %v883_v9, 0.0  ;;  %v805_v28 = vmul.f32 0.6923077, %v789_v12  ;;  %v643_v31 = vpop.permute.xlu1 %642  ;;  %v645_v32 = vpop.permute.xlu0 %644  ;;  %v853_v20 = vmul.f32 0.020278573, %v1407_v60 }
 0x273   :  { %v900_v33 = vmax.f32 %v884_v30, 0.0  ;;  %v854_v58 = vmul.f32 0.020278573, %v1450_v35  ;;  %v823_v7 = vmul.f32 0.30769232, %v1463_v63 }
 0x274   :  { %v806_v38 = vmul.f32 0.6923077, %v790_v15  ;;  %v915_v55 = vmin.f32 %v899_v27, 1.0  ;;  %v837_v11 = vadd.f32 %v821_v51, %v805_v28  ;;  %v743_v48 = vmul.f32 0.33333334, %v1531_v1 }
 0x275   :  { %v916_v53 = vmin.f32 %v900_v33, 1.0  ;;  %v730_v52 = vmul.f32 0.33333334, %v1529_v8  ;;  %v745_v8 = vmul.f32 0.33333334, %v1522_v5 }
 0x276   :  { %v838_v22 = vadd.f32 %v822_v37, %v806_v38  ;;  %v1013_v42 = vsel %vm1606_vm12, %v915_v55, %v1412_v2  ;;  %v869_v36 = vmul.f32 0.9797214, %v837_v11  ;;  %v675_v6 = vpop.permute.xlu1 %674  ;;  %v649_v0 = vpop.permute.xlu0 %648  ;;  %v744_v17 = vmul.f32 0.33333334, %v1537_v61 }
 0x277   :  { %1029 = vst [vmem:[#allocation2 + $0x48] sm:$0xff] %v1013_v42  ;;  %v1014_v54 = vsel %vm1606_vm12, %v916_v53, %v1392_v40  ;;  %v694_v50 = vsel %vm680_vm10, %v675_v6, %v643_v31  ;;  %v711_v47 = vsel %vm697_vm11, %v643_v31, %v675_v6  ;;  %v681_v1 = vsel %vm680_vm10, %v649_v0, %v617_v14 }
 0x278   :  { %v870_v16 = vmul.f32 0.9797214, %v838_v22  ;;  %1030 = vst [vmem:[#allocation2 + $0x50] sm:$0xff] %v1014_v54  ;;  %v885_v2 = vadd.f32 %v869_v36, %v853_v20  ;;  %v727_v10 = vmul.f32 0.33333334, %v694_v50  ;;  %v698_v39 = vsel %vm697_vm11, %v617_v14, %v649_v0 }
 0x279   :  { %v714_v40 = vmul.f32 0.33333334, %v681_v1  ;;  %v775_v45 = vmul.f32 0.33333334, %v711_v47  ;;  %v762_v57 = vmul.f32 0.33333334, %v698_v39 }
 0x27a   :  { %v886_v56 = vadd.f32 %v870_v16, %v854_v58  ;;  %v901_v18 = vmax.f32 %v885_v2, 0.0  ;;  %v759_v23 = vadd.f32 %v743_v48, %v727_v10  ;;  %v679_v24 = vpop.permute.xlu1 %678  ;;  %v677_v34 = vpop.permute.xlu0 %676  ;;  %v810_v28 = vmul.f32 0.30769232, %v1310_v46 }
 0x27b   :  { %v746_v25 = vadd.f32 %v730_v52, %v714_v40  ;;  %v696_v3 = vsel %vm680_vm10, %v679_v24, %v647_v4  ;;  %v713_v5 = vsel %vm697_vm11, %v647_v4, %v679_v24  ;;  %v695_v9 = vsel %vm680_vm10, %v677_v34, %v645_v32 }
 0x27c   :  { %v902_v21 = vmax.f32 %v886_v56, 0.0  ;;  %v917_v26 = vmin.f32 %v901_v18, 1.0  ;;  %v791_v62 = vadd.f32 %v775_v45, %v759_v23  ;;  %v729_v14 = vmul.f32 0.33333334, %v696_v3 }
 0x27d   :  { %v777_v19 = vmul.f32 0.33333334, %v713_v5  ;;  %v778_v61 = vadd.f32 %v762_v57, %v746_v25  ;;  %v712_v12 = vsel %vm697_vm11, %v645_v32, %v677_v34  ;;  %v728_v51 = vmul.f32 0.33333334, %v695_v9 }
 0x27e   :  { %v918_v13 = vmin.f32 %v902_v21, 1.0  ;;  %v1015_v30 = vsel %vm1606_vm12, %v917_v26, %v1407_v60  ;;  %v807_v15 = vmul.f32 0.6923077, %v791_v62  ;;  %v761_v27 = vadd.f32 %v745_v8, %v729_v14 }
 0x27f   :  { %1031 = vst [vmem:[#allocation2 + $0x58] sm:$0xff] %v1015_v30  ;;  %v794_v31 = vmul.f32 0.6923077, %v778_v61  ;;  %v760_v38 = vadd.f32 %v744_v17, %v728_v51  ;;  %v776_v32 = vmul.f32 0.33333334, %v712_v12 }
 0x280   :  { %v1016_v4 = vsel %vm1606_vm12, %v918_v13, %v1450_v35  ;;  %v839_v33 = vadd.f32 %v823_v7, %v807_v15  ;;  %v793_v37 = vadd.f32 %v777_v19, %v761_v27  ;;  %v855_v55 = vmul.f32 0.020278573, %v1463_v63 }
 0x281   :  { %1032 = vst [vmem:[#allocation2 + $0x60] sm:$0xff] %v1016_v4  ;;  %v826_v20 = vadd.f32 %v810_v28, %v794_v31  ;;  %v825_v60 = vmul.f32 0.30769232, %v1454_v49  ;;  %v792_v58 = vadd.f32 %v776_v32, %v760_v38  ;;  %v842_v35 = vmul.f32 0.020278573, %v1310_v46 }
 0x282   :  { %v871_v11 = vmul.f32 0.9797214, %v839_v33  ;;  %v809_v53 = vmul.f32 0.6923077, %v793_v37  ;;  %v824_v7 = vmul.f32 0.30769232, %v1441_v29 }
 0x283   :  { %v858_v22 = vmul.f32 0.9797214, %v826_v20  ;;  %v808_v6 = vmul.f32 0.6923077, %v792_v58  ;;  %v857_v0 = vmul.f32 0.020278573, %v1454_v49 }
 0x284   :  { %v887_v42 = vadd.f32 %v871_v11, %v855_v55  ;;  %v841_v36 = vadd.f32 %v825_v60, %v809_v53  ;;  %v856_v2 = vmul.f32 0.020278573, %v1441_v29 }
 0x285   :  { %v874_v48 = vadd.f32 %v858_v22, %v842_v35  ;;  %v840_v16 = vadd.f32 %v824_v7, %v808_v6 }
 0x286   :  { %v903_v52 = vmax.f32 %v887_v42, 0.0  ;;  %v873_v54 = vmul.f32 0.9797214, %v841_v36 }
 0x287   :  { %v890_v41 = vmax.f32 %v874_v48, 0.0  ;;  %v872_v10 = vmul.f32 0.9797214, %v840_v16 }
 0x288   :  { %v919_v50 = vmin.f32 %v903_v52, 1.0  ;;  %v889_v47 = vadd.f32 %v873_v54, %v857_v0 }
 0x289   :  { %v906_v1 = vmin.f32 %v890_v41, 1.0  ;;  %v888_v39 = vadd.f32 %v872_v10, %v856_v2 }
 0x28a   :  { %v1017_v8 = vsel %vm1606_vm12, %v919_v50, %v1463_v63  ;;  %v905_v56 = vmax.f32 %v889_v47, 0.0 }
 0x28b   :  { %1033 = vst [vmem:[#allocation2 + $0x68] sm:$0xff] %v1017_v8  ;;  %v1004_v40 = vsel %vm988_vm15, %v906_v1, %v1310_v46  ;;  %v904_v18 = vmax.f32 %v888_v39, 0.0 }
 0x28c   :  { %1020 = vst [vmem:[#allocation2] sm:$0xff] %v1004_v40  ;;  %v921_v17 = vmin.f32 %v905_v56, 1.0 }
 0x28d   :  { %v920_v23 = vmin.f32 %v904_v18, 1.0 }
 0x28e   :  { %v1019_v43 = vsel %vm1304_vm5, %v921_v17, %v1454_v49 }
 0x28f   :  { %1035 = vst [vmem:[#allocation2 + $0x78] sm:$0xff] %v1019_v43  ;;  %v1018_v63 = vsel %vm1606_vm12, %v920_v23, %v1441_v29 }
 0x290   :  { %1034 = vst [vmem:[#allocation2 + $0x70] sm:$0xff] %v1018_v63 }
 0x291   :  { %1188 = shalt.err (!%p1185_p4)
}
 0x292   :  { %s1189_s21 = scalar_lea.hbm %s1759_s3, 2048 }
 0x293   :  { %p1190_p5 = scmp.ne.s32.totalorder %s1759_s3, %s1189_s21  ;;  %p1193_p6 = scmp.lt.u32.totalorder %s1189_s21, %s1759_s3 }
 0x295   :  { %p1195_p7 = pnand %p1193_p6, %p1190_p5 }
 0x297   :  { %1198 = shalt.err (!%p1195_p7)
}
 0x298   :  { %s1204_s26 = smov 128   ;;  %s1205_s27 = smov 8  }
 0x299   :  { %1047 = dma.vmem_to_hbm [thread:$0]  %s1042_s17, 2048, %s1759_s3, [#allocation3], %s1204_s26, %s1204_s26, %s1205_s27  }
 0x29a   :  { %1199 = dma.done.wait [#allocation3], 2048  }
 0x29b   :  { %1200 = vsyncadd [#allocation3], 4294965248 }
 0x29c   :  { %1051 = vsyncpa [#allocation3], 1 }

</bundles_post_ra>
